<compile_context>
chip_gen: v7x
topology: tpu7x:2x2x1
jax: 0.10.0
libtpu: 0.0.40
codegen_flags: <defaults>
</compile_context>

<pallas_src>
import functools

import jax
import jax.numpy as jnp
from jax.experimental import pallas as pl
from jax.experimental.pallas import tpu as pltpu


def _down_conv_kernel(x_ref, w_ref, b_ref, o_ref):
    """One grid step: o = W @ X_taps + bias.

    x_ref : (1, 9*C_in, tw) bf16  -- 9 stride-2 taps stacked along K
    w_ref : (C_out, 9*C_in) bf16  -- VMEM-resident fused weights
    b_ref : (C_out, 1)      f32   -- VMEM-resident bias
    o_ref : (1, C_out, tw)        -- output tile (flat NCHW, lane = spatial)
    """
    acc = jnp.dot(w_ref[...], x_ref[0], preferred_element_type=jnp.float32)
    o_ref[0] = (acc + b_ref[...]).astype(o_ref.dtype)


def _ceil_to(a, m):
    return (a + m - 1) // m * m


@functools.partial(jax.jit, static_argnames=("tw_max", "use_bf16"))
def downconv_pallas(x, w, b, *, tw_max=1024, use_bf16=True):
    """3x3 conv, stride 2, padding 1 (PyTorch Conv2d semantics). NCHW in/out."""
    N, C, H, W = x.shape
    C_out = w.shape[0]
    H_out = (H + 2 - 3) // 2 + 1
    W_out = (W + 2 - 3) // 2 + 1
    HW = H_out * W_out
    K = 9 * C

    compute_dtype = jnp.bfloat16 if use_bf16 else x.dtype
    x_bytes = jnp.dtype(compute_dtype).itemsize
    out_bytes = jnp.dtype(x.dtype).itemsize

    # ---- tile selection: lane-dense tw (multiple of 128), bounded by a VMEM
    #      budget; then pad HW up to a multiple of tw.
    LANE = 128
    VMEM_BUDGET = 24 * 1024 * 1024

    def vmem_est(tw):
        return (2 * K * tw * x_bytes            # x tile, double-buffered
                + 2 * C_out * K * x_bytes       # resident weights (x2: safety)
                + 2 * C_out * 4                 # bias
                + 2 * C_out * tw * out_bytes)   # out tile, double-buffered

    tw_cap = _ceil_to(min(tw_max, max(HW, LANE)), LANE)
    while tw_cap > LANE and vmem_est(tw_cap) > VMEM_BUDGET:
        tw_cap -= LANE
    # Prefer the largest tw whose padding overhead is small; otherwise fall
    # back to the tw minimizing HW_pad (largest such tw on ties).
    allow = HW + max(HW // 8, LANE)
    tw = None
    for cand in range(tw_cap, LANE - 1, -LANE):
        if _ceil_to(HW, cand) <= allow:
            tw = cand
            break
    if tw is None:
        tw = max(range(LANE, tw_cap + 1, LANE),
                 key=lambda c: (-_ceil_to(HW, c), c))
    HW_pad = _ceil_to(HW, tw)

    # ---- glue: pad + 9 stride-2 tap views stacked along the contraction axis
    #      (cast to bf16 first so this single XLA fusion writes half the bytes).
    # TODO(synk): build the taps in-kernel with manual strided DMA from an
    # HBM-resident padded input (memory_space=pl.ANY) to remove this extra
    # HBM round-trip entirely; for now the gather is one fused wrapper pass.
    x_c = x.astype(compute_dtype)
    x_pad = jnp.pad(x_c, ((0, 0), (0, 0), (1, 1), (1, 1)))
    taps = []
    for kh in range(3):
        for kw in range(3):
            taps.append(
                x_pad[:, :, kh: kh + 2 * H_out - 1: 2,
                            kw: kw + 2 * W_out - 1: 2])
    x_taps = jnp.stack(taps, axis=1).reshape(N, K, HW)       # (N, 9*C, HW)
    if HW_pad != HW:
        x_taps = jnp.pad(x_taps, ((0, 0), (0, 0), (0, HW_pad - HW)))

    # Fused weights: (C_out, 9*C) with K index (kh*3+kw)*C + c_in, matching
    # the tap stacking order above (K on the lane axis: no in-loop transpose).
    w_fused = jnp.transpose(
        w.astype(compute_dtype), (0, 2, 3, 1)).reshape(C_out, K)
    b_col = b.astype(jnp.float32).reshape(C_out, 1)

    # Large spatial-tile axis first so v7x megacore splits on it, not on N.
    grid = (HW_pad // tw, N)

    flops = 2 * N * HW_pad * K * C_out
    bytes_accessed = (x_taps.size * x_bytes
                      + C_out * K * x_bytes
                      + C_out * 4
                      + N * C_out * HW_pad * out_bytes)

    vmem_limit = (32 * 1024 * 1024
                  if vmem_est(tw) > 12 * 1024 * 1024 else None)

    out_flat = pl.pallas_call(
        _down_conv_kernel,
        out_shape=jax.ShapeDtypeStruct((N, C_out, HW_pad), x.dtype),
        grid=grid,
        in_specs=[
            pl.BlockSpec((1, K, tw), lambda j, n: (n, 0, j)),
            pl.BlockSpec((C_out, K), lambda j, n: (0, 0)),   # VMEM-resident
            pl.BlockSpec((C_out, 1), lambda j, n: (0, 0)),   # VMEM-resident
        ],
        out_specs=pl.BlockSpec((1, C_out, tw), lambda j, n: (n, 0, j)),
        compiler_params=pltpu.CompilerParams(
            dimension_semantics=("parallel", "parallel"),
            vmem_limit_bytes=vmem_limit,
        ),
        cost_estimate=pl.CostEstimate(
            flops=flops, transcendentals=0, bytes_accessed=bytes_accessed),
    )(x_taps, w_fused, b_col)

    # Already in NCHW order: drop spatial padding and fold (H_out, W_out).
    out = out_flat[:, :, :HW].reshape(N, C_out, H_out, W_out)
    return out


class DownBlock:
    """JAX/Pallas port of the PyTorch DownBlock."""

    def __init__(self, channel, tppad, key):
        k_w, k_b = jax.random.split(key)
        fan_in = channel * 3 * 3
        bound = 1.0 / (fan_in ** 0.5)
        # deterministic, PyTorch-Conv2d-style uniform init (OIHW weight layout)
        self.weight = jax.random.uniform(
            k_w, (channel, channel, 3, 3), jnp.float32, -bound, bound)
        self.bias = jax.random.uniform(
            k_b, (channel,), jnp.float32, -bound, bound)
        self.tppad = tppad

    def __call__(self, x):
        x_out = downconv_pallas(x, self.weight, self.bias)
        # same bookkeeping side-effect as the torch module (shapes are static)
        if x_out.shape[-2] * 2 % x.shape[-2] == 1:
            self.tppad.append(1)
        else:
            self.tppad.append(0)
        return x_out


if __name__ == "__main__":
    key = jax.random.PRNGKey(0)
    k_x, k_p = jax.random.split(key)

    N, C, H, W = 2, 4, 16, 16
    x = jax.random.normal(k_x, (N, C, H, W), jnp.float32)

    tppad = []
    block = DownBlock(C, tppad, k_p)

    y = block(x)
    y = jax.block_until_ready(y)

    # Reference: XLA conv on the bf16-rounded inputs (kernel uses bf16 MXU
    # operands with f32 accumulation), bias added in f32.
    x_q = x.astype(jnp.bfloat16).astype(jnp.float32)
    w_q = block.weight.astype(jnp.bfloat16).astype(jnp.float32)
    y_ref = jax.lax.conv_general_dilated(
        x_q, w_q, window_strides=(2, 2), padding=((1, 1), (1, 1)),
        dimension_numbers=("NCHW", "OIHW", "NCHW"),
    ) + block.bias[None, :, None, None]

    assert y.shape == (N, C, H // 2, W // 2), y.shape
    assert y.dtype == x.dtype, y.dtype
    assert tppad == [0], tppad
    assert jnp.allclose(y, y_ref, atol=1e-3, rtol=1e-3), float(
        jnp.max(jnp.abs(y - y_ref)))

    print("KERNEL_OK")
</pallas_src>

<mosaic_0001>
module attributes {stable_mosaic.version = 11 : i64} {
  func.func @_down_conv_kernel(%arg0: i32, %arg1: i32, %arg2: memref<1x36x128xbf16, #tpu.memory_space<vmem>>, %arg3: memref<4x36xbf16, #tpu.memory_space<vmem>>, %arg4: memref<4x1xf32, #tpu.memory_space<vmem>>, %arg5: memref<1x4x128xf32, #tpu.memory_space<vmem>>) attributes {dimension_semantics = [#tpu.dimension_semantics<parallel>, #tpu.dimension_semantics<parallel>], iteration_bounds = array<i64: 1, 2>, scalar_prefetch = 0 : i64, scratch_operands = 0 : i64, tpu.core_type = #tpu.core_type<tc>, window_params = [{transform_indices = @transform_0, window_bounds = array<i64: 1, 36, 128>}, {pipeline_mode = #tpu.pipeline_mode<synchronous>, transform_indices = @transform_1, window_bounds = array<i64: 4, 36>}, {pipeline_mode = #tpu.pipeline_mode<synchronous>, transform_indices = @transform_2, window_bounds = array<i64: 4, 1>}, {transform_indices = @transform_3, window_bounds = array<i64: 1, 4, 128>}]} {
    %c0 = arith.constant 0 : index
    %c0_0 = arith.constant 0 : index
    %0 = vector.load %arg3[%c0, %c0_0] : memref<4x36xbf16, #tpu.memory_space<vmem>>, vector<4x36xbf16>
    %c0_1 = arith.constant 0 : index
    %c0_2 = arith.constant 0 : index
    %c0_3 = arith.constant 0 : index
    %1 = vector.load %arg2[%c0_1, %c0_2, %c0_3] : memref<1x36x128xbf16, #tpu.memory_space<vmem>>, vector<1x36x128xbf16>
    %2 = vector.shape_cast %1 : vector<1x36x128xbf16> to vector<36x128xbf16>
    %cst = arith.constant dense<0.000000e+00> : vector<4x128xf32>
    %3 = tpu.matmul %0, %2, %cst {dimension_numbers = #tpu.dot_dimension_numbers<[1], [0], [0], [1], [0, 0, 1, 1], [], []>} : vector<4x36xbf16>, vector<36x128xbf16>, vector<4x128xf32> -> vector<4x128xf32>
    %c0_4 = arith.constant 0 : index
    %c0_5 = arith.constant 0 : index
    %4 = vector.load %arg4[%c0_4, %c0_5] : memref<4x1xf32, #tpu.memory_space<vmem>>, vector<4x1xf32>
    %5 = vector.broadcast %4 : vector<4x1xf32> to vector<4x128xf32>
    %6 = arith.addf %3, %5 : vector<4x128xf32>
    %c0_6 = arith.constant 0 : index
    %c0_7 = arith.constant 0 : index
    %c0_8 = arith.constant 0 : index
    %7 = vector.load %arg5[%c0_6, %c0_7, %c0_8] : memref<1x4x128xf32, #tpu.memory_space<vmem>>, vector<1x4x128xf32>
    %8 = vector.shape_cast %7 : vector<1x4x128xf32> to vector<4x128xf32>
    %9 = vector.shape_cast %6 : vector<4x128xf32> to vector<1x4x128xf32>
    tpu.vector_store %arg5[%c0_6, %c0_7, %c0_8], %9 {strides = array<i32>} : memref<1x4x128xf32, #tpu.memory_space<vmem>>, vector<1x4x128xf32>,
    return
  }
  func.func @transform_0(%arg0: i32, %arg1: i32) -> (i32, i32, i32) {
    %c0_i32 = arith.constant 0 : i32
    %c0_i32_0 = arith.constant 0 : i32
    return %arg1, %c0_i32, %arg0 : i32, i32, i32
  }
  func.func @transform_1(%arg0: i32, %arg1: i32) -> (i32, i32) {
    %c0_i32 = arith.constant 0 : i32
    %c0_i32_0 = arith.constant 0 : i32
    %c0_i32_1 = arith.constant 0 : i32
    return %c0_i32, %c0_i32_0 : i32, i32
  }
  func.func @transform_2(%arg0: i32, %arg1: i32) -> (i32, i32) {
    %c0_i32 = arith.constant 0 : i32
    %c0_i32_0 = arith.constant 0 : i32
    %c0_i32_1 = arith.constant 0 : i32
    return %c0_i32, %c0_i32_0 : i32, i32
  }
  func.func @transform_3(%arg0: i32, %arg1: i32) -> (i32, i32, i32) {
    %c0_i32 = arith.constant 0 : i32
    %c0_i32_0 = arith.constant 0 : i32
    return %arg1, %c0_i32, %arg0 : i32, i32, i32
  }
}

</mosaic_0001>

<bundles_post_ra>
// kernel: downconv_pallas.1
= control target key start
LH: loop header
LB: loop body
LE: loop exit
PB: predicated region body
PF: predicated region fallthrough
CT: control target
= control target key end

     0   :  { %s460_s12 = smov 0   ;;  %s462_s13 = smov 0   ;;  %s499_s0 = inlined_call_operand.vmem [shape: bf16[2,36,128], index: 0, kind: input, shape index: {}]   ;;  %s500_s1 = inlined_call_operand.vmem [shape: bf16[4,36], index: 1, kind: input, shape index: {}]   ;;  %s501_s2 = inlined_call_operand.vmem [shape: f32[4,1], index: 2, kind: input, shape index: {}]   ;;  %s502_s3 = inlined_call_operand.vmem [shape: f32[2,4,128], index: 3, kind: output, shape index: {}]  }
   0x1   :  { %s464_s14 = smov 0  }
   0x2 LB: > { %s22_s15 = sadd.s32 1, %s431_s13  ;;  %p358_p0 = scmp.ge.s32.totalorder %s435_s14, 1  ;;  %s435_s14 = sphi %s464_s14, %s13_s14   ;;  %s431_s13 = sphi %s462_s13, %s504_s13   ;;  %s427_s12 = sphi %s460_s12, %s503_s12  }
   0x3   : > { %p23_p1 = scmp.ge.s32.totalorder %s22_s15, 2  ;;  %p156_p2 = scmp.lt.s32.totalorder %s435_s14, 3 }
   0x5   : > { %s506_s15 = smov (%p23_p1, %s22_s15), 0  ;;  %p157_p3 = pnand %p358_p0, %p156_p2 }
   0x6   : > { %p185_p4 = scmp.lt.s32.totalorder (!%p157_p3), %s427_s12, 1  ;;  %v437_v0 = vmov (!%p157_p3), 0.0   ;;  %vm438_vm0 = vmmov (!%p157_p3), 0   ;;  %v207_v1 = vld [vmem:[%s501_s2] sm:$0xf] (!%p157_p3)  ;;  %v439_v2 = vmov (!%p157_p3), 0  }
   0x7   : > { %160 = sbr.rel (%p157_p3) target bundleno = 245 (0xf5), region = 32  ;;  %371 = vmatprep.subr.bf16.mxu0 (!%p157_p3), %v437_v0  ;;  %377 = vmatprep.mubr.msk.bf16.mxu0 (!%p157_p3), %vm438_vm0, %v437_v0  ;;  %vm232_vm1 = vcmask (!%p157_p3), 1041408   ;;  %v201_v7 = vld [vmem:[%s500_s1] sm:$0x3] (!%p157_p3)  ;;  %vm228_vm2 = vcmask (!%p157_p3), 293888  }
   0x8   : > { %409 = vset.pattern.permute.xlu0 (!%p157_p3), %v439_v2 }
   0x9   : > { %210 = vperm.xlu0 (!%p157_p3), %409, %v207_v1  }
   0xe   : > { %s508_s12 = smov (!%p185_p4, %s427_s12), 1 }
   0xf   : > { %s381_s18 = smul.u32 20, %s508_s12  ;;  %s360_s24 = sshll.u32 %s508_s12, 2 }
  0x10   : > { %s199_s27 = scalar_lea.vmem %s502_s3, %s360_s24 }
  0x11   : > { %s192_s21 = scalar_lea.vmem %s499_s0, %s381_s18 }
  0x12   : > { %v410_v3 = vld [vmem:[%s192_s21] sm:$0xff]   ;;  %v411_v4 = vld [vmem:[%s192_s21 + $0x8] sm:$0xff]   ;;  %v412_v5 = vld [vmem:[%s192_s21 + $0x10] ss:$0 sps:$4 sm:$0x33]  }
  0x13   : > { %372 = vmatpush3.bf16.msra.mxu0 %v410_v3  ;;  %v234_v6 = vsel %vm232_vm1, %v412_v5, 0 }
  0x14   : > { %373 = vmatprep.subr.bf16.mxu0 %v437_v0 }
  0x17   : > { %374 = vmatpush3.bf16.msra.mxu0 %v411_v4 }
  0x18   : > { %375 = vmatprep.subr.bf16.mxu0 %v437_v0 }
  0x1b   : > { %376 = vmatpush3.bf16.msra.mxu0 %v234_v6 }
  0x1e   : > { %378 = vmatmul.mubr.msk.bf16.vlgmr.msra.gmra.mrb[0].mxu0 %vm228_vm2, %v201_v7 }
  0x88   : > { %v211_v8 = vpop.permute.xlu0 %210 }
  0xf1   : > { %v270_v9 = vpop.f32.mrb[0].mxu0 }
  0xf2   : > { %v271_v10 = vadd.f32 %v270_v9, %v211_v8  ;;  %v379_v11 = vpop.f32.mrb[1].mxu0 }
  0xf3   : > { %v273_v12 = vpop.f32.mrb[2].mxu0 }
  0xf4   : > { %276 = vst [vmem:[%s199_s27] sm:$0xf] %v271_v10  ;;  %v380_v13 = vpop.f32.mrb[3].mxu0 }
  0xf5 PF: > { %s13_s14 = sadd.s32 1, %s435_s14   ;;  %s503_s12 = smov %s431_s13 }
  0xf6   : > { %p10_p5 = scmp.ge.s32.totalorder %s13_s14, 4   ;;  %s504_s13 = smov %s506_s15 }
  0xf8   :  { %12 = sbr.rel (!%p10_p5) target bundleno = 2 (0x2), region = 62 }

</bundles_post_ra>
